<compile_context>
chip_gen: v6e
topology: v6e:2x2x1
jax: 0.10.0
libtpu: 0.0.40
codegen_flags: <defaults>
</compile_context>

<pallas_src>
import functools

import jax
import jax.numpy as jnp
from jax.experimental import pallas as pl
from jax.experimental.pallas import tpu as pltpu

NEG_FILL = -1e30        # masks already-extracted maxima in the serial path
_SERIAL_MAX_K = 24      # below this, k serial max-extractions beat bisection
_BISECT_ITERS = 30      # interval shrinks by 2^30 -> threshold error ~1e-9


def _clamped_log(x):
    # nn.BCELoss clamps log at -100 (avoids -inf / 0*(-inf) NaNs downstream).
    return jnp.maximum(jnp.log(x), -100.0)


def _topk_sum_serial(x, k):
    """Sum of the k largest per row via k max-extractions (small k)."""
    rows, _ = x.shape
    acc = jnp.zeros((rows, 1), jnp.float32)
    cur = x
    for step in range(k):
        m = jnp.max(cur, axis=-1, keepdims=True)
        acc = acc + m
        if step + 1 < k:
            # Mask every occurrence of the current max (no argmin tie-break).
            cur = jnp.where(cur == m, NEG_FILL, cur)
    return acc


def _topk_sum_bisect(x, k):
    """Sum of the k largest per row via threshold bisection (large k).

    ~_BISECT_ITERS lane reduces, independent of k. Only lo/hi ([rows,1]) are
    carried, so vreg pressure stays low even for long t.
    """
    rows, _ = x.shape
    kf = float(k)
    lo = jnp.min(x, axis=-1, keepdims=True)   # count(x >= lo) = t >= k
    hi = jnp.max(x, axis=-1, keepdims=True)
    for _ in range(_BISECT_ITERS):
        mid = 0.5 * (lo + hi)
        cnt = jnp.sum((x >= mid).astype(jnp.float32), axis=-1, keepdims=True)
        ge = cnt >= kf
        lo = jnp.where(ge, mid, lo)
        hi = jnp.where(ge, hi, mid)
    # lo ~ k-th largest value (from below). Robust tie/over-count correction:
    keep = (x >= lo).astype(jnp.float32)
    cnt = jnp.sum(keep, axis=-1, keepdims=True)            # >= k
    s = jnp.sum(x * keep, axis=-1, keepdims=True)
    return s - (cnt - kf) * lo


def _topk_sum(x, k):
    if k < _SERIAL_MAX_K:
        return _topk_sum_serial(x, k)
    return _topk_sum_bisect(x, k)


def ad_loss_block_kernel(att_ref, a_att_ref, n_att_ref, a_natt_ref, n_aatt_ref,
                         tkm_ref, nsum_ref, ansum_ref, *, k):
    # Block shapes (leading grid dim of size 1):
    #   att_ref    : (1, 2rb, t)   frame attention for rb batch pairs
    #   a_att_ref  : (1, rb, t)    N_att/A_Natt/N_Aatt likewise
    #   tkm_ref    : (1, 4rb, 1)   per-row top-k means (frame | A_att | 1-N_Aatt)
    #   nsum_ref   : (1, rb, 1)    per-row sum of -log(N_att)
    #   ansum_ref  : (1, rb, 1)    per-row sum of -log(1 - A_Natt)
    att = att_ref[0].astype(jnp.float32)        # [2rb, t]
    a_att = a_att_ref[0].astype(jnp.float32)    # [rb, t]
    n_att = n_att_ref[0].astype(jnp.float32)    # [rb, t]
    a_natt = a_natt_ref[0].astype(jnp.float32)  # [rb, t]
    n_aatt = n_aatt_ref[0].astype(jnp.float32)  # [rb, t]

    # Batch the three top-k operand groups into one sublane-filled tile so the
    # XLU-bound extraction chain runs once (complement done in-kernel: free VPU).
    topk_in = jnp.concatenate([att, a_att, 1.0 - n_aatt], axis=0)   # [4rb, t]
    tkm_ref[0] = _topk_sum(topk_in, k) * (1.0 / float(k))           # [4rb, 1]

    # Constant-target elementwise BCEs reduce to a single clamped log each;
    # only the per-row sums leave the kernel.
    nsum_ref[0] = jnp.sum(-_clamped_log(n_att), axis=-1, keepdims=True)
    ansum_ref[0] = jnp.sum(-_clamped_log(1.0 - a_natt), axis=-1, keepdims=True)


def ad_loss(result, label):
    """JAX/Pallas equivalent of AD_Loss.forward. Returns (cost, loss_dict)."""
    # Native transport dtype (bf16 stays bf16 on the wire); compute is f32 in-kernel.
    att = jnp.asarray(result['frame'])        # [2b, t]
    a_att = jnp.asarray(result['A_att'])      # [b, t]
    n_att = jnp.asarray(result['N_att'])      # [b, t]
    a_natt = jnp.asarray(result['A_Natt'])    # [b, t]
    n_aatt = jnp.asarray(result['N_Aatt'])    # [b, t]
    label_f = jnp.asarray(label, jnp.float32).reshape(-1)   # [2b]

    two_b, t = att.shape
    b = two_b // 2
    k = t // 16 + 1

    # Rows per grid block (rb batch pairs). Prefer >=2 grid steps so v7x's two
    # TensorCores both get work; rb=2 fills the 8-sublane tile for the top-k slab.
    rb = 1
    for cand in (4, 2):
        if b % cand == 0 and b // cand >= 2:
            rb = cand
            break
    nb = b // rb

    # Contiguous reshapes only add a leading grid axis (metadata, no HBM copy).
    att_r = att.reshape(nb, 2 * rb, t)
    a_att_r = a_att.reshape(nb, rb, t)
    n_att_r = n_att.reshape(nb, rb, t)
    a_natt_r = a_natt.reshape(nb, rb, t)
    n_aatt_r = n_aatt.reshape(nb, rb, t)

    steps = k if k < _SERIAL_MAX_K else _BISECT_ITERS + 3
    cost_est = pl.CostEstimate(
        flops=int(3 * steps * 4 * b * t + 6 * 2 * b * t),
        transcendentals=int(2 * b * t),
        bytes_accessed=int(att.dtype.itemsize * 6 * b * t + 4 * 6 * b),
    )

    big = pl.BlockSpec((1, 2 * rb, t), lambda i: (i, 0, 0))
    small = pl.BlockSpec((1, rb, t), lambda i: (i, 0, 0))

    # TODO(synk): for extreme frame counts (t so large that a single row set of
    # f32 intermediates exceeds the scoped VMEM limit) additionally tile over t
    # with a per-tile top-k candidate merge / bisection across tiles.
    tkm, nsum, ansum = pl.pallas_call(
        functools.partial(ad_loss_block_kernel, k=k),
        grid=(nb,),
        in_specs=[big, small, small, small, small],
        out_specs=(pl.BlockSpec((1, 4 * rb, 1), lambda i: (i, 0, 0)),
                   pl.BlockSpec((1, rb, 1), lambda i: (i, 0, 0)),
                   pl.BlockSpec((1, rb, 1), lambda i: (i, 0, 0))),
        out_shape=(jax.ShapeDtypeStruct((nb, 4 * rb, 1), jnp.float32),
                   jax.ShapeDtypeStruct((nb, rb, 1), jnp.float32),
                   jax.ShapeDtypeStruct((nb, rb, 1), jnp.float32)),
        compiler_params=pltpu.CompilerParams(
            dimension_semantics=("parallel",)),
        cost_estimate=cost_est,
    )(att_r, a_att_r, n_att_r, a_natt_r, n_aatt_r)

    # ---- tiny O(b) scalar finalize in plain JAX (per reviewer guidance) ----
    tkm = tkm[..., 0]                                  # (nb, 4rb)
    frame_tkm = tkm[:, :2 * rb].reshape(2 * b)         # global row order
    a_tkm = tkm[:, 2 * rb:3 * rb].reshape(b)
    pano_tkm = tkm[:, 3 * rb:].reshape(b)

    anomaly_loss = jnp.mean(-(label_f * _clamped_log(frame_tkm)
                              + (1.0 - label_f) * _clamped_log(1.0 - frame_tkm)))
    a_loss = jnp.mean(-_clamped_log(a_tkm))            # target = ones
    panomaly_loss = jnp.mean(-_clamped_log(pano_tkm))  # target = ones

    denom = float(b * t)
    n_loss = jnp.sum(nsum) / denom
    a_nloss = jnp.sum(ansum) / denom

    triplet = jnp.asarray(result['triplet_margin'], jnp.float32)
    kl_loss = jnp.asarray(result['kl_loss'], jnp.float32)
    distance = jnp.asarray(result['distance'], jnp.float32)

    cost = (anomaly_loss
            + 0.1 * (a_loss + panomaly_loss + n_loss + a_nloss)
            + 0.1 * triplet + 0.001 * kl_loss + 0.0001 * distance)

    loss = {
        'total_loss': cost,
        'att_loss': anomaly_loss,
        'N_Aatt': panomaly_loss,
        'A_loss': a_loss,
        'N_loss': n_loss,
        'A_Nloss': a_nloss,
        'triplet': triplet,
        'kl_loss': kl_loss,
    }
    return cost, loss


def _ref_loss(result, label):
    """Pure-JAX reference (mirrors the PyTorch forward) for validation."""
    def bce(p, y):
        logp = jnp.maximum(jnp.log(p), -100.0)
        log1mp = jnp.maximum(jnp.log(1.0 - p), -100.0)
        return jnp.mean(-(y * logp + (1.0 - y) * log1mp))

    att = result['frame']
    t = att.shape[1]
    k = t // 16 + 1
    b = label.shape[0] // 2

    def tkm(x):
        return jnp.mean(jax.lax.top_k(x, k)[0], axis=-1)

    anomaly_loss = bce(tkm(att), label.astype(jnp.float32))
    panomaly_loss = bce(tkm(1.0 - result['N_Aatt']), jnp.ones((b,), jnp.float32))
    a_loss = bce(tkm(result['A_att']), jnp.ones((b,), jnp.float32))
    n_loss = bce(result['N_att'], jnp.ones_like(result['N_att']))
    a_nloss = bce(result['A_Natt'], jnp.zeros_like(result['A_Natt']))
    cost = (anomaly_loss + 0.1 * (a_loss + panomaly_loss + n_loss + a_nloss)
            + 0.1 * result['triplet_margin'] + 0.001 * result['kl_loss']
            + 0.0001 * result['distance'])
    refs = {
        'total_loss': cost,
        'att_loss': anomaly_loss,
        'N_Aatt': panomaly_loss,
        'A_loss': a_loss,
        'N_loss': n_loss,
        'A_Nloss': a_nloss,
    }
    return cost, refs


if __name__ == "__main__":
    def make_case(b, t):
        ks = jax.random.split(jax.random.PRNGKey(0), 6)
        eps = 1e-3  # keep probabilities strictly inside (0, 1) for BCE

        def uprob(k_, shape):
            return jax.random.uniform(k_, shape, jnp.float32, eps, 1.0 - eps)

        result = {
            'frame': uprob(ks[0], (2 * b, t)),
            'A_att': uprob(ks[1], (b, t)),
            'N_att': uprob(ks[2], (b, t)),
            'A_Natt': uprob(ks[3], (b, t)),
            'N_Aatt': uprob(ks[4], (b, t)),
            'triplet_margin': jnp.float32(0.5),
            'kl_loss': jnp.float32(0.2),
            'distance': jnp.float32(1.5),
        }
        # first half anomalous (label 1), second half normal (label 0)
        label = jnp.concatenate([jnp.ones((b,), jnp.float32),
                                 jnp.zeros((b,), jnp.float32)])
        return result, label

    # (b=4, t=32): serial top-k path (k=3), 2-block parallel grid.
    # (b=2, t=512): bisection top-k path (k=33), 2-block parallel grid.
    for (b, t) in [(4, 32), (2, 512)]:
        result, label = make_case(b, t)
        cost, loss = ad_loss(result, label)
        cost = jax.block_until_ready(cost)

        ref_cost, ref_terms = _ref_loss(result, label)
        ref_cost = jax.block_until_ready(ref_cost)

        assert jnp.allclose(cost, ref_cost, rtol=1e-4, atol=1e-5), (b, t, cost, ref_cost)
        for name, ref_v in ref_terms.items():
            assert jnp.allclose(loss[name], ref_v, rtol=1e-4, atol=1e-5), (
                b, t, name, loss[name], ref_v)
        assert bool(jnp.isfinite(cost))

    print("KERNEL_OK")
</pallas_src>

<mosaic_0001>
module attributes {stable_mosaic.version = 11 : i64} {
  func.func @ad_loss_block_kernel(%arg0: i32, %arg1: memref<1x4x32xf32, #tpu.memory_space<vmem>>, %arg2: memref<1x2x32xf32, #tpu.memory_space<vmem>>, %arg3: memref<1x2x32xf32, #tpu.memory_space<vmem>>, %arg4: memref<1x2x32xf32, #tpu.memory_space<vmem>>, %arg5: memref<1x2x32xf32, #tpu.memory_space<vmem>>, %arg6: memref<1x8x1xf32, #tpu.memory_space<vmem>>, %arg7: memref<1x2x1xf32, #tpu.memory_space<vmem>>, %arg8: memref<1x2x1xf32, #tpu.memory_space<vmem>>) attributes {dimension_semantics = [#tpu.dimension_semantics<parallel>], iteration_bounds = array<i64: 2>, scalar_prefetch = 0 : i64, scratch_operands = 0 : i64, tpu.core_type = #tpu.core_type<tc>, window_params = [{transform_indices = @transform_0, window_bounds = array<i64: 1, 4, 32>}, {transform_indices = @transform_1, window_bounds = array<i64: 1, 2, 32>}, {transform_indices = @transform_2, window_bounds = array<i64: 1, 2, 32>}, {transform_indices = @transform_3, window_bounds = array<i64: 1, 2, 32>}, {transform_indices = @transform_4, window_bounds = array<i64: 1, 2, 32>}, {transform_indices = @transform_5, window_bounds = array<i64: 1, 8, 1>}, {transform_indices = @transform_6, window_bounds = array<i64: 1, 2, 1>}, {transform_indices = @transform_7, window_bounds = array<i64: 1, 2, 1>}]} {
    %c0 = arith.constant 0 : index
    %c0_0 = arith.constant 0 : index
    %c0_1 = arith.constant 0 : index
    %0 = vector.load %arg1[%c0, %c0_0, %c0_1] : memref<1x4x32xf32, #tpu.memory_space<vmem>>, vector<1x4x32xf32>
    %1 = vector.shape_cast %0 : vector<1x4x32xf32> to vector<4x32xf32>
    %c0_2 = arith.constant 0 : index
    %c0_3 = arith.constant 0 : index
    %c0_4 = arith.constant 0 : index
    %2 = vector.load %arg2[%c0_2, %c0_3, %c0_4] : memref<1x2x32xf32, #tpu.memory_space<vmem>>, vector<1x2x32xf32>
    %3 = vector.shape_cast %2 : vector<1x2x32xf32> to vector<2x32xf32>
    %c0_5 = arith.constant 0 : index
    %c0_6 = arith.constant 0 : index
    %c0_7 = arith.constant 0 : index
    %4 = vector.load %arg3[%c0_5, %c0_6, %c0_7] : memref<1x2x32xf32, #tpu.memory_space<vmem>>, vector<1x2x32xf32>
    %5 = vector.shape_cast %4 : vector<1x2x32xf32> to vector<2x32xf32>
    %c0_8 = arith.constant 0 : index
    %c0_9 = arith.constant 0 : index
    %c0_10 = arith.constant 0 : index
    %6 = vector.load %arg4[%c0_8, %c0_9, %c0_10] : memref<1x2x32xf32, #tpu.memory_space<vmem>>, vector<1x2x32xf32>
    %7 = vector.shape_cast %6 : vector<1x2x32xf32> to vector<2x32xf32>
    %c0_11 = arith.constant 0 : index
    %c0_12 = arith.constant 0 : index
    %c0_13 = arith.constant 0 : index
    %8 = vector.load %arg5[%c0_11, %c0_12, %c0_13] : memref<1x2x32xf32, #tpu.memory_space<vmem>>, vector<1x2x32xf32>
    %9 = vector.shape_cast %8 : vector<1x2x32xf32> to vector<2x32xf32>
    %cst = arith.constant 1.000000e+00 : f32
    %10 = vector.broadcast %cst : f32 to vector<2x32xf32>
    %11 = arith.subf %10, %9 : vector<2x32xf32>
    %12 = tpu.concatenate %1, %3, %11 in 0 : vector<4x32xf32>, vector<2x32xf32>, vector<2x32xf32> -> vector<8x32xf32>
    %cst_14 = arith.constant 0.000000e+00 : f32
    %13 = vector.broadcast %cst_14 : f32 to vector<8x1xf32>
    %cst_15 = arith.constant dense<0xFF800000> : vector<8xf32>
    %14 = vector.multi_reduction <maximumf>, %12, %cst_15 [1] : vector<8x32xf32> to vector<8xf32>
    %15 = vector.shape_cast %14 : vector<8xf32> to vector<8x1xf32>
    %16 = arith.addf %13, %15 : vector<8x1xf32>
    %17 = vector.broadcast %15 : vector<8x1xf32> to vector<8x32xf32>
    %18 = arith.cmpf oeq, %12, %17 : vector<8x32xf32>
    %cst_16 = arith.constant -1.000000e+30 : f32
    %19 = vector.broadcast %cst_16 : f32 to vector<8x32xf32>
    %20 = arith.select %18, %19, %12 : vector<8x32xi1>, vector<8x32xf32>
    %cst_17 = arith.constant dense<0xFF800000> : vector<8xf32>
    %21 = vector.multi_reduction <maximumf>, %20, %cst_17 [1] : vector<8x32xf32> to vector<8xf32>
    %22 = vector.shape_cast %21 : vector<8xf32> to vector<8x1xf32>
    %23 = arith.addf %16, %22 : vector<8x1xf32>
    %24 = vector.broadcast %22 : vector<8x1xf32> to vector<8x32xf32>
    %25 = arith.cmpf oeq, %20, %24 : vector<8x32xf32>
    %cst_18 = arith.constant -1.000000e+30 : f32
    %26 = vector.broadcast %cst_18 : f32 to vector<8x32xf32>
    %27 = arith.select %25, %26, %20 : vector<8x32xi1>, vector<8x32xf32>
    %cst_19 = arith.constant dense<0xFF800000> : vector<8xf32>
    %28 = vector.multi_reduction <maximumf>, %27, %cst_19 [1] : vector<8x32xf32> to vector<8xf32>
    %29 = vector.shape_cast %28 : vector<8xf32> to vector<8x1xf32>
    %30 = arith.addf %23, %29 : vector<8x1xf32>
    %cst_20 = arith.constant 0.333333343 : f32
    %31 = vector.broadcast %cst_20 : f32 to vector<8x1xf32>
    %32 = arith.mulf %30, %31 : vector<8x1xf32>
    %c0_21 = arith.constant 0 : index
    %c0_22 = arith.constant 0 : index
    %c0_23 = arith.constant 0 : index
    %33 = vector.load %arg6[%c0_21, %c0_22, %c0_23] : memref<1x8x1xf32, #tpu.memory_space<vmem>>, vector<1x8x1xf32>
    %34 = vector.shape_cast %33 : vector<1x8x1xf32> to vector<8x1xf32>
    %35 = vector.shape_cast %32 : vector<8x1xf32> to vector<1x8x1xf32>
    tpu.vector_store %arg6[%c0_21, %c0_22, %c0_23], %35 {strides = array<i32>} : memref<1x8x1xf32, #tpu.memory_space<vmem>>, vector<1x8x1xf32>,
    %36 = math.log %5 : vector<2x32xf32>
    %cst_24 = arith.constant -1.000000e+02 : f32
    %37 = vector.broadcast %cst_24 : f32 to vector<2x32xf32>
    %38 = arith.maximumf %36, %37 : vector<2x32xf32>
    %cst_25 = arith.constant 0.000000e+00 : f32
    %39 = vector.broadcast %cst_25 : f32 to vector<2x32xf32>
    %40 = arith.subf %39, %38 : vector<2x32xf32>
    %cst_26 = arith.constant dense<0.000000e+00> : vector<2xf32>
    %41 = vector.multi_reduction <add>, %40, %cst_26 [1] : vector<2x32xf32> to vector<2xf32>
    %42 = vector.shape_cast %41 : vector<2xf32> to vector<2x1xf32>
    %c0_27 = arith.constant 0 : index
    %c0_28 = arith.constant 0 : index
    %c0_29 = arith.constant 0 : index
    %43 = vector.load %arg7[%c0_27, %c0_28, %c0_29] : memref<1x2x1xf32, #tpu.memory_space<vmem>>, vector<1x2x1xf32>
    %44 = vector.shape_cast %43 : vector<1x2x1xf32> to vector<2x1xf32>
    %45 = vector.shape_cast %42 : vector<2x1xf32> to vector<1x2x1xf32>
    tpu.vector_store %arg7[%c0_27, %c0_28, %c0_29], %45 {strides = array<i32>} : memref<1x2x1xf32, #tpu.memory_space<vmem>>, vector<1x2x1xf32>,
    %cst_30 = arith.constant 1.000000e+00 : f32
    %46 = vector.broadcast %cst_30 : f32 to vector<2x32xf32>
    %47 = arith.subf %46, %7 : vector<2x32xf32>
    %48 = math.log %47 : vector<2x32xf32>
    %cst_31 = arith.constant -1.000000e+02 : f32
    %49 = vector.broadcast %cst_31 : f32 to vector<2x32xf32>
    %50 = arith.maximumf %48, %49 : vector<2x32xf32>
    %cst_32 = arith.constant 0.000000e+00 : f32
    %51 = vector.broadcast %cst_32 : f32 to vector<2x32xf32>
    %52 = arith.subf %51, %50 : vector<2x32xf32>
    %cst_33 = arith.constant dense<0.000000e+00> : vector<2xf32>
    %53 = vector.multi_reduction <add>, %52, %cst_33 [1] : vector<2x32xf32> to vector<2xf32>
    %54 = vector.shape_cast %53 : vector<2xf32> to vector<2x1xf32>
    %c0_34 = arith.constant 0 : index
    %c0_35 = arith.constant 0 : index
    %c0_36 = arith.constant 0 : index
    %55 = vector.load %arg8[%c0_34, %c0_35, %c0_36] : memref<1x2x1xf32, #tpu.memory_space<vmem>>, vector<1x2x1xf32>
    %56 = vector.shape_cast %55 : vector<1x2x1xf32> to vector<2x1xf32>
    %57 = vector.shape_cast %54 : vector<2x1xf32> to vector<1x2x1xf32>
    tpu.vector_store %arg8[%c0_34, %c0_35, %c0_36], %57 {strides = array<i32>} : memref<1x2x1xf32, #tpu.memory_space<vmem>>, vector<1x2x1xf32>,
    return
  }
  func.func @transform_0(%arg0: i32) -> (i32, i32, i32) {
    %c0_i32 = arith.constant 0 : i32
    %c0_i32_0 = arith.constant 0 : i32
    %c0_i32_1 = arith.constant 0 : i32
    return %arg0, %c0_i32, %c0_i32_0 : i32, i32, i32
  }
  func.func @transform_1(%arg0: i32) -> (i32, i32, i32) {
    %c0_i32 = arith.constant 0 : i32
    %c0_i32_0 = arith.constant 0 : i32
    %c0_i32_1 = arith.constant 0 : i32
    return %arg0, %c0_i32, %c0_i32_0 : i32, i32, i32
  }
  func.func @transform_2(%arg0: i32) -> (i32, i32, i32) {
    %c0_i32 = arith.constant 0 : i32
    %c0_i32_0 = arith.constant 0 : i32
    %c0_i32_1 = arith.constant 0 : i32
    return %arg0, %c0_i32, %c0_i32_0 : i32, i32, i32
  }
  func.func @transform_3(%arg0: i32) -> (i32, i32, i32) {
    %c0_i32 = arith.constant 0 : i32
    %c0_i32_0 = arith.constant 0 : i32
    %c0_i32_1 = arith.constant 0 : i32
    return %arg0, %c0_i32, %c0_i32_0 : i32, i32, i32
  }
  func.func @transform_4(%arg0: i32) -> (i32, i32, i32) {
    %c0_i32 = arith.constant 0 : i32
    %c0_i32_0 = arith.constant 0 : i32
    %c0_i32_1 = arith.constant 0 : i32
    return %arg0, %c0_i32, %c0_i32_0 : i32, i32, i32
  }
  func.func @transform_5(%arg0: i32) -> (i32, i32, i32) {
    %c0_i32 = arith.constant 0 : i32
    %c0_i32_0 = arith.constant 0 : i32
    %c0_i32_1 = arith.constant 0 : i32
    return %arg0, %c0_i32, %c0_i32_0 : i32, i32, i32
  }
  func.func @transform_6(%arg0: i32) -> (i32, i32, i32) {
    %c0_i32 = arith.constant 0 : i32
    %c0_i32_0 = arith.constant 0 : i32
    %c0_i32_1 = arith.constant 0 : i32
    return %arg0, %c0_i32, %c0_i32_0 : i32, i32, i32
  }
  func.func @transform_7(%arg0: i32) -> (i32, i32, i32) {
    %c0_i32 = arith.constant 0 : i32
    %c0_i32_0 = arith.constant 0 : i32
    %c0_i32_1 = arith.constant 0 : i32
    return %arg0, %c0_i32, %c0_i32_0 : i32, i32, i32
  }
}

</mosaic_0001>

<bundles_post_ra>
// kernel: tpu_custom_call.1
= control target key start
LH: loop header
LB: loop body
LE: loop exit
PB: predicated region body
PF: predicated region fallthrough
CT: control target
= control target key end

     0   :  { %s1188_s0 = inlined_call_operand.hbm [shape: f32[2,4,32], index: 0, kind: input, shape index: {}]   ;;  %s1189_s1 = inlined_call_operand.hbm [shape: f32[2,2,32], index: 1, kind: input, shape index: {}]   ;;  %s1190_s2 = inlined_call_operand.hbm [shape: f32[2,2,32], index: 2, kind: input, shape index: {}]   ;;  %s1191_s3 = inlined_call_operand.vmem [shape: f32[2,2,32], index: 3, kind: input, shape index: {}]   ;;  %s1192_s4 = inlined_call_operand.hbm [shape: f32[2,2,32], index: 4, kind: input, shape index: {}]   ;;  %s1193_s5 = inlined_call_operand.vmem [shape: f32[2,8,1], index: 5, kind: output, shape index: {0}]   ;;  %s1194_s6 = inlined_call_operand.vmem [shape: f32[2,2,1], index: 6, kind: output, shape index: {1}]   ;;  %s1195_s7 = inlined_call_operand.vmem [shape: f32[2,2,1], index: 7, kind: output, shape index: {2}]  }
   0x1   :  { %1200 = sst [smem:[#allocation15_spill]] %s1189_s1 }
   0x2   :  { %1201 = sst [smem:[#allocation16_spill]] %s1194_s6 }
   0x3   :  { %13 = vsyncpa [#allocation3], 0 }
   0x4   :  { %15 = vsyncpa [#allocation3 + $0x1], 0 }
   0x5   :  { %16 = vsyncpa [#allocation5], 0 }
   0x6   :  { %18 = vsyncpa [#allocation5 + $0x1], 0 }
   0x7   :  { %19 = vsyncpa [#allocation8], 0 }
   0x8   :  { %21 = vsyncpa [#allocation8 + $0x1], 0  ;;  %s980_s24 = smov 0   ;;  %s982_s25 = smov 0  }
   0x9   :  { %s984_s26 = smov 0   ;;  %s986_s27 = smov 0  }
   0xa LB: > { %1202 = sst [smem:[#allocation12_spill]] %s930_s26  ;;  %s999_s28 = sadd.s32 4294967295, %s934_s27   ;;  %s934_s27 = sphi %s986_s27, %s1213_s27   ;;  %s930_s26 = sphi %s984_s26, %s1215_s26   ;;  %s926_s25 = sphi %s982_s25, %s1217_s25   ;;  %s922_s24 = sphi %s980_s24, %s1216_s24  }
   0xb   : > { %s1002_s29 = sadd.s32 1, %s934_s27   ;;  %s34_s8 = sadd.s32 1, %s930_s26 }
   0xc   : > { %1203 = sst [smem:[#allocation13_spill]] %s1002_s29  ;;  %s31_s30 = ssub.s32 %s934_s27, %s1002_s29 }
   0xd   : > { %p32_p0 = scmp.eq.s32.totalorder %s31_s30, 0  ;;  %p41_p1 = scmp.ne.s32.totalorder %s930_s26, %s926_s25 }
   0xe   : > { %p42_p2 = scmp.eq.s32.totalorder %s934_s27, 0  ;;  %p47_p3 = scmp.ne.s32.totalorder %s926_s25, %s922_s24 }
   0xf   : > { %s1012_s9 = scalar_select %p32_p0, %s930_s26, %s34_s8  }
  0x10   : > { %p43_p4 = por %p42_p2, %p41_p1  ;;  %p48_p5 = scmp.eq.s32.totalorder %s999_s28, 0 }
  0x11   : > { %1204 = sst [smem:[#allocation14_spill]] %s1012_s9  ;;  %p743_p6 = scmp.lt.s32.totalorder %s934_s27, 2 }
  0x12   : > { %p1016_p7 = por %p48_p5, %p47_p3  ;;  %s1021_s11 = sand.u32 1, %s930_s26  }
  0x13   : > { %p1023_p8 = pnand %p743_p6, %p43_p4  ;;  %s271_s13 = sand.u32 1, %s934_s27  }
  0x14   : > { %s1205_s10 = scalar_select %p1016_p7, 1, 0 }
  0x15   : > { %s1029_s14 = sshll.u32 %s1021_s11, 1  ;;  %s1032_s15 = sshll.u32 %s934_s27, 5 }
  0x16   : > { %s275_s16 = scalar_lea.vmem [#allocation4], %s1029_s14  ;;  %s1207_s1 = sld [smem:[#allocation15_spill]] }
  0x17   : > { %s282_s17 = sshll.u32 %s275_s16, 4  ;;  %s1039_s21 = scalar_lea.sflag [#allocation5], %s271_s13  ;;  %s283_s17 = int_to_ptr.vmem [resolvable:$true] %s282_s17 }
  0x18   : > { %p1043_p10 = pneg %p1023_p8 }
  0x1c   : > { %s280_s20 = scalar_lea.hbm %s1207_s1, %s1032_s15  ;;  %s785_s8 = scalar_lea.hbm %s1207_s1, 64 }
  0x1d   : > { %s780_s22 = scalar_lea.hbm %s280_s20, 32  ;;  %p786_p13 = scmp.lt.s32.totalorder %s280_s20, %s1207_s1 }
  0x1e   : > { %p781_p9 = scmp.ne.s32.totalorder %s280_s20, %s780_s22  ;;  %p787_p0 = scmp.lt.s32.totalorder %s785_s8, %s780_s22 }
  0x20   : > { %p783_p11 = pnand %p1043_p10, %p781_p9  ;;  %p788_p1 = por %p787_p0, %p786_p13 }
  0x22   : > { %p784_p12 = pneg %p783_p11 }
  0x24   : > { %p789_p2 = pnand %p788_p1, %p784_p12 }
  0x26   : > { %792 = shalt.err (!%p789_p2)
}
  0x27   : > { %s793_s13 = scalar_lea.vmem %s283_s17, 32  ;;  %s936_s19 = smov [#allocation4]  }
  0x28   : > { %p794_p3 = scmp.ne.s32.totalorder %s283_s17, %s793_s13  ;;  %s798_s9 = sshll.u32 %s936_s19, 4  ;;  %s799_s9 = int_to_ptr.vmem [resolvable:$false] %s798_s9 }
  0x29   : > { %s800_s26 = scalar_lea.vmem %s799_s9, 64  ;;  %p801_p6 = scmp.lt.s32.totalorder %s283_s17, %s799_s9 }
  0x2a   : > { %p796_p4 = pnand %p794_p3, %p1043_p10  ;;  %p802_p9 = scmp.lt.s32.totalorder %s800_s26, %s793_s13 }
  0x2c   : > { %p797_p5 = pneg %p796_p4  ;;  %p803_p11 = por %p802_p9, %p801_p6 }
  0x2e   : > { %p804_p7 = pnand %p803_p11, %p797_p5 }
  0x30   : > { %807 = shalt.err (!%p804_p7)
}
  0x31   : > { %736 = dma.hbm_to_vmem [thread:$0]  (!%p1023_p8), %s280_s20, 32, %s283_s17, %s1039_s21  }
  0x32   : > { %p711_p12 = scmp.ge.s32.totalorder %s934_s27, 1  ;;  %p330_p13 = scmp.lt.s32.totalorder %s934_s27, 3 }
  0x33   : > { %s703_s22 = sshll.u32 %s1021_s11, 2  ;;  %s704_s26 = sshll.u32 %s934_s27, 6 }
  0x34   : > { %p1063_p0 = pnand %p711_p12, %p330_p13  ;;  %s257_s9 = scalar_lea.vmem [#allocation2], %s703_s22 }
  0x35   : > { %s264_s30 = sshll.u32 %s257_s9, 4  ;;  %s262_s18 = scalar_lea.hbm %s1188_s0, %s704_s26  ;;  %s265_s30 = int_to_ptr.vmem [resolvable:$true] %s264_s30 }
  0x36   : > { %s1209_s24 = scalar_select %p1063_p0, 1, 0 }
  0x37   : > { %s254_s13 = scalar_lea.sflag [#allocation3], %s1021_s11  ;;  %s808_s19 = scalar_lea.hbm %s262_s18, 64 }
  0x38   : > { %p809_p7 = scmp.ne.s32.totalorder %s262_s18, %s808_s19  ;;  %s813_s1 = scalar_lea.hbm %s1188_s0, 128 }
  0x39   : > { %p814_p3 = scmp.lt.s32.totalorder %s262_s18, %s1188_s0  ;;  %p815_p4 = scmp.lt.s32.totalorder %s813_s1, %s808_s19 }
  0x3a   : > { %p811_p1 = pnand %p809_p7, %p1043_p10 }
  0x3b   : > { %p816_p5 = por %p815_p4, %p814_p3 }
  0x3c   : > { %p812_p2 = pneg %p811_p1 }
  0x3e   : > { %p817_p6 = pnand %p816_p5, %p812_p2 }
  0x40   : > { %820 = shalt.err (!%p817_p6)
}
  0x41   : > { %s821_s27 = scalar_lea.vmem %s265_s30, 64  ;;  %s937_s22 = smov [#allocation2]  }
  0x42   : > { %p822_p9 = scmp.ne.s32.totalorder %s265_s30, %s821_s27  ;;  %s826_s26 = sshll.u32 %s937_s22, 4  ;;  %s827_s26 = int_to_ptr.vmem [resolvable:$false] %s826_s26 }
  0x43   : > { %s828_s9 = scalar_lea.vmem %s827_s26, 128  ;;  %p829_p13 = scmp.lt.s32.totalorder %s265_s30, %s827_s26 }
  0x44   : > { %p824_p11 = pnand %p822_p9, %p1043_p10  ;;  %p830_p7 = scmp.lt.s32.totalorder %s828_s9, %s821_s27 }
  0x46   : > { %p825_p12 = pneg %p824_p11  ;;  %p831_p1 = por %p830_p7, %p829_p13 }
  0x48   : > { %p832_p0 = pnand %p831_p1, %p825_p12 }
  0x4a   : > { %835 = shalt.err (!%p832_p0)
}
  0x4b   : > { %733 = dma.hbm_to_vmem [thread:$0]  (!%p1023_p8), %s262_s18, 64, %s265_s30, %s254_s13  }
  0x4c   : > { %s298_s29 = scalar_lea.hbm %s1190_s2, %s1032_s15  ;;  %s293_s8 = scalar_lea.vmem [#allocation6], %s1029_s14 }
  0x4d   : > { %s300_s16 = sshll.u32 %s293_s8, 4  ;;  %s836_s19 = scalar_lea.hbm %s298_s29, 32  ;;  %s301_s16 = int_to_ptr.vmem [resolvable:$true] %s300_s16 }
  0x4e   : > { %p837_p2 = scmp.ne.s32.totalorder %s298_s29, %s836_s19  ;;  %s841_s27 = scalar_lea.hbm %s1190_s2, 64 }
  0x4f   : > { %p842_p0 = scmp.lt.s32.totalorder %s298_s29, %s1190_s2  ;;  %p843_p5 = scmp.lt.s32.totalorder %s841_s27, %s836_s19 }
  0x50   : > { %p839_p3 = pnand %p837_p2, %p1043_p10 }
  0x51   : > { %p844_p6 = por %p843_p5, %p842_p0 }
  0x52   : > { %p840_p4 = pneg %p839_p3 }
  0x54   : > { %p845_p9 = pnand %p844_p6, %p840_p4 }
  0x56   : > { %848 = shalt.err (!%p845_p9)
}
  0x57   : > { %s849_s30 = scalar_lea.vmem %s301_s16, 32  ;;  %s938_s18 = smov [#allocation6]  }
  0x58   : > { %p850_p11 = scmp.ne.s32.totalorder %s301_s16, %s849_s30  ;;  %s854_s13 = sshll.u32 %s938_s18, 4  ;;  %s855_s13 = int_to_ptr.vmem [resolvable:$false] %s854_s13 }
  0x59   : > { %s856_s9 = scalar_lea.vmem %s855_s13, 64  ;;  %p857_p7 = scmp.lt.s32.totalorder %s301_s16, %s855_s13 }
  0x5a   : > { %p852_p12 = pnand %p850_p11, %p1043_p10  ;;  %p858_p1 = scmp.lt.s32.totalorder %s856_s9, %s849_s30 }
  0x5c   : > { %p853_p13 = pneg %p852_p12  ;;  %p859_p2 = por %p858_p1, %p857_p7 }
  0x5e   : > { %p860_p3 = pnand %p859_p2, %p853_p13 }
  0x60   : > { %863 = shalt.err (!%p860_p3)
}
  0x61   : > { %739 = dma.hbm_to_vmem [thread:$0]  (!%p1023_p8), %s298_s29, 32, %s301_s16, %s1039_s21  }
  0x62   : > { %s1106_s8 = scalar_lea.hbm %s1192_s4, %s1032_s15  ;;  %s318_s19 = scalar_lea.vmem [#allocation7], %s1029_s14 }
  0x63   : > { %s325_s17 = sshll.u32 %s318_s19, 4  ;;  %s315_s20 = scalar_lea.sflag [#allocation8], %s1021_s11  ;;  %s326_s17 = int_to_ptr.vmem [resolvable:$true] %s325_s17 }
  0x64   : > { %s864_s27 = scalar_lea.hbm %s1106_s8, 32  ;;  %s869_s21 = scalar_lea.hbm %s1192_s4, 64 }
  0x65   : > { %p865_p4 = scmp.ne.s32.totalorder %s1106_s8, %s864_s27  ;;  %p870_p6 = scmp.lt.s32.totalorder %s1106_s8, %s1192_s4 }
  0x66   : > { %p871_p9 = scmp.lt.s32.totalorder %s869_s21, %s864_s27 }
  0x67   : > { %p867_p0 = pnand %p865_p4, %p1043_p10 }
  0x68   : > { %p872_p11 = por %p871_p9, %p870_p6 }
  0x69   : > { %p868_p5 = pneg %p867_p0 }
  0x6b   : > { %p873_p12 = pnand %p872_p11, %p868_p5 }
  0x6d   : > { %876 = shalt.err (!%p873_p12)
}
  0x6e   : > { %s877_s14 = scalar_lea.vmem %s326_s17, 32  ;;  %s939_s11 = smov [#allocation7]  }
  0x6f   : > { %p878_p13 = scmp.ne.s32.totalorder %s326_s17, %s877_s14  ;;  %s882_s15 = sshll.u32 %s939_s11, 4  ;;  %s883_s15 = int_to_ptr.vmem [resolvable:$false] %s882_s15 }
  0x70   : > { %s884_s30 = scalar_lea.vmem %s883_s15, 64  ;;  %p885_p2 = scmp.lt.s32.totalorder %s326_s17, %s883_s15 }
  0x71   : > { %p880_p7 = pnand %p878_p13, %p1043_p10  ;;  %p886_p3 = scmp.lt.s32.totalorder %s884_s30, %s877_s14 }
  0x73   : > { %p881_p1 = pneg %p880_p7  ;;  %p887_p4 = por %p886_p3, %p885_p2 }
  0x75   : > { %p888_p0 = pnand %p887_p4, %p881_p1 }
  0x77   : > { %891 = shalt.err (!%p888_p0)
}
  0x78   : > { %742 = dma.hbm_to_vmem [thread:$0]  (!%p1023_p8), %s1106_s8, 32, %s326_s17, %s315_s20  }
  0x79   : > { %p1210_p5 = scmp.ne.s32.totalorder %s1209_s24, 0 }
  0x7a   : > { %s336_s23 = sand.u32 (!%p1210_p5), 1, %s926_s25   ;;  %p1211_p10 = scmp.ne.s32.totalorder (!%p1210_p5), %s1205_s10, 0 }
  0x7b   : > { %334 = sbr.rel (%p1210_p5) target bundleno = 569 (0x239), region = 40  ;;  %s712_s18 = sshll.u32 (!%p1210_p5), %s336_s23, 2 }
  0x7c   : > { %s337_s13 = scalar_lea.sflag (!%p1210_p5), [#allocation3], %s336_s23  ;;  %s340_s9 = scalar_lea.vmem (!%p1210_p5), [#allocation2], %s712_s18 }
  0x80   : > { %909 = dma.done.wait (%p1211_p10), %s337_s13, 64  }
  0x81   : > { %911 = vsyncadd (%p1211_p10), %s337_s13, 4294967232  ;;  %s345_s1 = sand.u32 1, %s999_s28   ;;  %s1134_s12 = sshll.u32 %s336_s23, 1 }
  0x82   : > { %s346_s6 = scalar_lea.sflag [#allocation5], %s345_s1  ;;  %s349_s24 = scalar_lea.vmem [#allocation4], %s1134_s12 }
  0x83   : > { %913 = dma.done.wait (%p1211_p10), %s346_s6, 64  }
  0x84   : > { %915 = vsyncadd (%p1211_p10), %s346_s6, 4294967232  ;;  %s358_s8 = scalar_lea.vmem [#allocation6], %s1134_s12  ;;  %s364_s19 = scalar_lea.sflag [#allocation8], %s336_s23 }
  0x85   : > { %s367_s17 = scalar_lea.vmem [#allocation7], %s1134_s12 }
  0x86   : > { %917 = dma.done.wait (%p1211_p10), %s364_s19, 32  }
  0x87   : > { %919 = vsyncadd (%p1211_p10), %s364_s19, 4294967264  ;;  %vm452_vm0 = vcmask 1043456   ;;  %v440_v0 = vld [vmem:[%s340_s9] sm:$0xf]  ;;  %v441_v1 = vld [vmem:[%s349_s24] sm:$0x3] }
  0x88   : > { %v444_v2 = vld [vmem:[%s367_s17] sm:$0x3]  ;;  %v447_v4 = vrot.slane %v441_v1, 4  ;;  %vm454_vm1 = vcmask 1045504   ;;  %vm456_vm2 = vcmask 261120   ;;  %p424_p8 = scmp.lt.s32.totalorder %s999_s28, 1 }
  0x89   : > { %v445_v3 = vsub.f32 1.0, %v444_v2  ;;  %vm480_vm4 = vcmask 254976   ;;  %v442_v19 = vld [vmem:[%s358_s8] sm:$0x3]  ;;  %vm484_vm6 = vcmask 1024   ;;  %vm474_vm7 = vcmask 7168  }
  0x8a   : > { %v453_v6 = vsel %vm452_vm0, %v440_v0, %v447_v4  ;;  %s1219_s28 = smov (!%p424_p8, %s999_s28), 1  ;;  %s1212_s18 = sld [smem:[#allocation16_spill]] }
  0x8b   : > { %v450_v5 = vrot.slane %v445_v3, 2  ;;  %s1153_s10 = sshll.u32 %s1219_s28, 1  ;;  %s717_s16 = sshll.u32 %s1219_s28, 3 }
  0x8c   : > { %s427_s22 = scalar_lea.vmem %s1191_s3, %s1153_s10  ;;  %s439_s29 = scalar_lea.vmem %s1195_s7, %s1153_s10 }
  0x8d   : > { %v455_v7 = vsel %vm454_vm1, %v453_v6, %v450_v5  ;;  %v443_v9 = vld [vmem:[%s427_s22] sm:$0x3]  ;;  %s431_s15 = scalar_lea.vmem %s1193_s5, %s717_s16 }
  0x8e   : > { %v457_v8 = vsel %vm456_vm2, %v455_v7, -inf  ;;  %v486_v10 = vsub.f32 1.0, %v443_v9 }
  0x8f   : > { %458 = vmax.xlane.f32.xlu0 %v457_v8 }
  0x90   : > { %776 = vlog2.f32 %v486_v10  ;;  %s435_s13 = scalar_lea.vmem %s1212_s18, %s1153_s10 }
  0x91   : > { %778 = vlog2.f32 %v442_v19 }
  0x9d   : > { %v777_v14 = vpop.eup %776 }
  0x9e   : > { %v488_v15 = vmul.f32 0.6931472, %v777_v14  ;;  %v779_v20 = vpop.eup %778 }
  0x9f   : > { %v477_v21 = vmul.f32 0.6931472, %v779_v20 }
  0xa0   : > { %v489_v16 = vmax.f32 %v488_v15, -100.0 }
  0xa1   : > { %v478_v22 = vmax.f32 %v477_v21, -100.0 }
  0xa2   : > { %v490_v17 = vsub.f32 0.0, %v489_v16 }
  0xa3   : > { %v479_v24 = vsub.f32 0.0, %v478_v22 }
  0xa4   : > { %v491_v18 = vsel %vm480_vm4, %v490_v17, 0.0 }
  0xa5   : > { %v481_v27 = vsel %vm480_vm4, %v479_v24, 0.0 }
 0x118   : > { %v459_v11 = vpop.xlane.xlu0 %458 }
 0x119   : > { %vm461_vm3 = vcmp.eq.f32.partialorder %v455_v7, %v459_v11 }
 0x11a   : > { %v462_v12 = vsel %vm461_vm3, -1e+30, %v455_v7 }
 0x11b   : > { %v463_v13 = vsel %vm456_vm2, %v462_v12, -inf }
 0x11c   : > { %464 = vmax.xlane.f32.xlu0 %v463_v13 }
 0x120   : > { %492 = vadd.xlane.f32.xlu0 %v491_v18 }
 0x1a5   : > { %v465_v23 = vpop.xlane.xlu0 %464 }
 0x1a6   : > { %vm467_vm5 = vcmp.eq.f32.partialorder %v462_v12, %v465_v23  ;;  %v466_v29 = vadd.f32 %v465_v23, %v459_v11 }
 0x1a7   : > { %v468_v25 = vsel %vm467_vm5, -1e+30, %v462_v12 }
 0x1a8   : > { %v469_v26 = vsel %vm456_vm2, %v468_v25, -inf }
 0x1a9   : > { %470 = vmax.xlane.f32.xlu1 %v469_v26  ;;  %v493_v28 = vpop.xlane.xlu0 %492 }
 0x1aa   : > { %494 = vst.msk [vmem:[%s439_s29] sm:$0x3] %vm484_vm6, %v493_v28 }
 0x1ad   : > { %482 = vadd.xlane.f32.xlu1 %v481_v27 }
 0x232   : > { %v471_v30 = vpop.xlane.xlu1 %470 }
 0x233   : > { %v472_v31 = vadd.f32 %v471_v30, %v466_v29 }
 0x235   : > { %v473_v32 = vmul.f32 0.33333334, %v472_v31 }
 0x236   : > { %v483_v33 = vpop.xlane.xlu1 %482 }
 0x237   : > { %475 = vst.msk [vmem:[%s431_s15] sm:$0xff] %vm474_vm7, %v473_v32 }
 0x238   : > { %485 = vst.msk [vmem:[%s435_s13] sm:$0x3] %vm484_vm6, %v483_v33 }
 0x239 PF: > { %s1213_s27 = sld [smem:[#allocation13_spill]]  ;;  %s1216_s24 = smov %s926_s25 }
 0x23a   : > { %s1214_s9 = sld [smem:[#allocation12_spill]] }
 0x23b   : > { %s1215_s26 = sld [smem:[#allocation14_spill]] }
 0x23f   : > { %p24_p6 = scmp.ge.s32.totalorder %s1213_s27, 4  }
 0x240   : > { %s1217_s25 = smov %s1214_s9 }
 0x241   :  { %26 = sbr.rel (!%p24_p6) target bundleno = 10 (0xa), region = 144 }
 0x246   :  { %542 = vsyncpa [#allocation3], 1 }
 0x247   :  { %544 = vsyncpa [#allocation3 + $0x1], 1 }
 0x248   :  { %545 = vsyncpa [#allocation5], 1 }
 0x249   :  { %547 = vsyncpa [#allocation5 + $0x1], 1 }
 0x24a   :  { %548 = vsyncpa [#allocation8], 1 }
 0x24b   :  { %550 = vsyncpa [#allocation8 + $0x1], 1 }

</bundles_post_ra>
